<compile_context>
chip_gen: v6e
topology: v6e:2x2x1
jax: 0.10.0
libtpu: 0.0.40
codegen_flags: <defaults>
</compile_context>

<pallas_src>
import jax
import jax.numpy as jnp
from jax.experimental import pallas as pl
from jax.experimental.pallas import tpu as pltpu

# ---- model hyperparameters (small, consistent with the module) ----
BATCH = 2
SEQ = 8
D_MODEL = 32
N_HEADS = 4
D_K = D_MODEL // N_HEADS
D_FF = 64
EPS = 1e-5


def encoder_block_kernel(
    x_ref, mask_ref,
    wq_ref, bq_ref, wk_ref, bk_ref, wv_ref, bv_ref, woh_ref, bo_ref,
    gamma_ref, beta_ref,
    w1_ref, b1_ref, w2_ref, b2_ref,
    o_ref,
):
    x = x_ref[...]          # (B*SEQ, D_MODEL)
    mask = mask_ref[...]    # (B*SEQ, B*SEQ) block-diagonal validity mask

    # ---- multi-head self-attention (weights pre-transposed to (in, out)) ----
    q = jnp.dot(x, wq_ref[...], preferred_element_type=jnp.float32) + bq_ref[...]
    k = jnp.dot(x, wk_ref[...], preferred_element_type=jnp.float32) + bk_ref[...]
    v = jnp.dot(x, wv_ref[...], preferred_element_type=jnp.float32) + bv_ref[...]

    # split heads: (N, D_MODEL) -> (H, N, D_K)
    def split_heads(t):
        return jnp.stack(
            [t[:, h * D_K:(h + 1) * D_K] for h in range(N_HEADS)], axis=0)

    qh = split_heads(q)
    kh = split_heads(k)
    vh = split_heads(v)

    # additive mask bias, computed once and shared by every head
    bias = jnp.where(mask == 0.0, jnp.float32(-1e9), jnp.float32(0.0))  # (N, N)

    scale = jnp.float32(1.0) / jnp.sqrt(jnp.float32(D_K))
    s = jnp.einsum('hqd,hkd->hqk', qh, kh,
                   preferred_element_type=jnp.float32) * scale          # (H,N,N)
    s = s + bias[None, :, :]
    # softmax(dim=-1), max-subtracted (numerically equivalent)
    s = s - jnp.max(s, axis=-1, keepdims=True)
    p = jnp.exp(s)
    p = p * pl.reciprocal(jnp.sum(p, axis=-1, keepdims=True), approx=True)
    ctx = jnp.einsum('hqk,hkd->hqd', p, vh,
                     preferred_element_type=jnp.float32)                # (H,N,D_K)

    # output projection folded per head:
    #   concat_h(ctx_h) @ Wo.T  ==  sum_h ctx_h @ Wo.T[h*D_K:(h+1)*D_K, :]
    attn = jnp.einsum('hnf,hfd->hnd', ctx, woh_ref[...],
                      preferred_element_type=jnp.float32)               # (H,N,D)
    attn = jnp.sum(attn, axis=0) + bo_ref[...]                          # (N, D)

    # dropout (eval mode) == identity
    gamma = gamma_ref[...]   # (1, D_MODEL)
    beta = beta_ref[...]

    def layer_norm(y):
        # matches LayerNormalization: torch.std (unbiased, N-1), eps added to std
        mean = jnp.mean(y, axis=-1, keepdims=True)
        var = jnp.sum((y - mean) ** 2, axis=-1, keepdims=True) * (
            1.0 / jnp.float32(D_MODEL - 1))
        std = jnp.sqrt(var)
        return gamma * (y - mean) / (std + EPS) + beta

    x1 = layer_norm(x + attn)

    # ---- feed-forward ----
    hdn = jnp.dot(x1, w1_ref[...], preferred_element_type=jnp.float32) + b1_ref[...]
    hdn = jnp.maximum(hdn, 0.0)
    ff = jnp.dot(hdn, w2_ref[...], preferred_element_type=jnp.float32) + b2_ref[...]

    # dropout (eval mode) == identity
    o_ref[...] = layer_norm(x1 + ff)


def encoder_block(x, src_mask, params):
    B, S, D = x.shape
    (wq, bq, wk, bk, wv, bv, wo, bo, gamma, beta, w1, b1, w2, b2) = params

    # ---- one-time wrapper-side layout transforms (zero kernel cost) ----
    x2 = x.reshape(B * S, D)
    wq_t = wq.T          # (in, out)
    wk_t = wk.T
    wv_t = wv.T
    w1_t = w1.T          # (D_MODEL, D_FF)
    w2_t = w2.T          # (D_FF, D_MODEL)
    # fold wo per head: wo_heads[h] = wo.T[h*D_K:(h+1)*D_K, :]
    wo_heads = wo.T.reshape(N_HEADS, D_K, D)

    # block-diagonal mask over the flattened batch (cross-batch entries = 0)
    rows = []
    for b in range(B):
        row = [src_mask[b] if bb == b else jnp.zeros((S, S), src_mask.dtype)
               for bb in range(B)]
        rows.append(jnp.concatenate(row, axis=1))
    mask_full = jnp.concatenate(rows, axis=0)        # (B*S, B*S)

    vmem = pl.BlockSpec(memory_space=pltpu.MemorySpace.VMEM)

    out = pl.pallas_call(
        encoder_block_kernel,
        out_shape=jax.ShapeDtypeStruct((B * S, D), jnp.float32),
        in_specs=[vmem] * 16,
        out_specs=vmem,
    )(x2, mask_full, wq_t, bq, wk_t, bk, wv_t, bv, wo_heads, bo,
      gamma, beta, w1_t, b1, w2_t, b2)

    return out.reshape(B, S, D)


# ---- pure-JAX reference for correctness ----
def encoder_block_ref(x, src_mask, params):
    (wq, bq, wk, bk, wv, bv, wo, bo, gamma, beta, w1, b1, w2, b2) = params
    B, S, D = x.shape

    def lin(y, w, b):
        return jnp.einsum("bsd,od->bso", y, w) + b[0]

    q = lin(x, wq, bq).reshape(B, S, N_HEADS, D_K).transpose(0, 2, 1, 3)
    k = lin(x, wk, bk).reshape(B, S, N_HEADS, D_K).transpose(0, 2, 1, 3)
    v = lin(x, wv, bv).reshape(B, S, N_HEADS, D_K).transpose(0, 2, 1, 3)
    s = jnp.einsum("bhqd,bhkd->bhqk", q, k) / jnp.sqrt(jnp.float32(D_K))
    s = jnp.where(src_mask[:, None, :, :] == 0, -1e9, s)
    p = jax.nn.softmax(s, axis=-1)
    attn = jnp.einsum("bhqk,bhkd->bhqd", p, v).transpose(0, 2, 1, 3).reshape(B, S, D)
    attn = lin(attn, wo, bo)

    def ln(y):
        mean = jnp.mean(y, axis=-1, keepdims=True)
        std = jnp.sqrt(jnp.sum((y - mean) ** 2, axis=-1, keepdims=True) / (D - 1))
        return gamma[0] * (y - mean) / (std + EPS) + beta[0]

    x1 = ln(x + attn)
    ff = lin(jnp.maximum(lin(x1, w1, b1), 0.0), w2, b2)
    return ln(x1 + ff)


def init_params(key):
    ks = jax.random.split(key, 8)
    scale = 0.05
    wq = scale * jax.random.normal(ks[0], (D_MODEL, D_MODEL), jnp.float32)
    wk = scale * jax.random.normal(ks[1], (D_MODEL, D_MODEL), jnp.float32)
    wv = scale * jax.random.normal(ks[2], (D_MODEL, D_MODEL), jnp.float32)
    wo = scale * jax.random.normal(ks[3], (D_MODEL, D_MODEL), jnp.float32)
    w1 = scale * jax.random.normal(ks[4], (D_FF, D_MODEL), jnp.float32)
    w2 = scale * jax.random.normal(ks[5], (D_MODEL, D_FF), jnp.float32)
    bq = scale * jax.random.normal(ks[6], (1, D_MODEL), jnp.float32)
    bk = jnp.zeros((1, D_MODEL), jnp.float32)
    bv = jnp.full((1, D_MODEL), 0.01, jnp.float32)
    bo = jnp.zeros((1, D_MODEL), jnp.float32)
    b1 = jnp.zeros((1, D_FF), jnp.float32)
    b2 = jnp.zeros((1, D_MODEL), jnp.float32)
    gamma = jnp.ones((1, D_MODEL), jnp.float32)   # LayerNormalization.gamma
    beta = jnp.zeros((1, D_MODEL), jnp.float32)   # LayerNormalization.beta
    return (wq, bq, wk, bk, wv, bv, wo, bo, gamma, beta, w1, b1, w2, b2)


if __name__ == "__main__":
    key = jax.random.PRNGKey(0)
    k_x, k_p = jax.random.split(key)
    x = jax.random.normal(k_x, (BATCH, SEQ, D_MODEL), jnp.float32)

    # src_mask: (batch, seq, seq); batch 1 has its last two key positions masked
    lengths = jnp.array([SEQ, SEQ - 2])
    key_valid = (jnp.arange(SEQ)[None, :] < lengths[:, None]).astype(jnp.float32)
    src_mask = jnp.broadcast_to(key_valid[:, None, :], (BATCH, SEQ, SEQ))

    params = init_params(k_p)

    out = encoder_block(x, src_mask, params)
    out = jax.block_until_ready(out)

    ref = encoder_block_ref(x, src_mask, params)
    assert out.shape == (BATCH, SEQ, D_MODEL)
    # 1e-3 tolerance covers pl.reciprocal(approx=True) in the softmax denominator
    assert jnp.allclose(out, ref, atol=1e-3, rtol=1e-3), float(jnp.max(jnp.abs(out - ref)))

    print("KERNEL_OK")
</pallas_src>

<mosaic_0001>
module attributes {stable_mosaic.version = 11 : i64} {
  func.func @encoder_block_kernel(%arg0: memref<16x32xf32, #tpu.memory_space<vmem>>, %arg1: memref<16x16xf32, #tpu.memory_space<vmem>>, %arg2: memref<32x32xf32, #tpu.memory_space<vmem>>, %arg3: memref<1x32xf32, #tpu.memory_space<vmem>>, %arg4: memref<32x32xf32, #tpu.memory_space<vmem>>, %arg5: memref<1x32xf32, #tpu.memory_space<vmem>>, %arg6: memref<32x32xf32, #tpu.memory_space<vmem>>, %arg7: memref<1x32xf32, #tpu.memory_space<vmem>>, %arg8: memref<4x8x32xf32, #tpu.memory_space<vmem>>, %arg9: memref<1x32xf32, #tpu.memory_space<vmem>>, %arg10: memref<1x32xf32, #tpu.memory_space<vmem>>, %arg11: memref<1x32xf32, #tpu.memory_space<vmem>>, %arg12: memref<32x64xf32, #tpu.memory_space<vmem>>, %arg13: memref<1x64xf32, #tpu.memory_space<vmem>>, %arg14: memref<64x32xf32, #tpu.memory_space<vmem>>, %arg15: memref<1x32xf32, #tpu.memory_space<vmem>>, %arg16: memref<16x32xf32, #tpu.memory_space<vmem>>) attributes {dimension_semantics = [], scalar_prefetch = 0 : i64, scratch_operands = 0 : i64, tpu.core_type = #tpu.core_type<tc>} {
    %c0 = arith.constant 0 : index
    %c0_0 = arith.constant 0 : index
    %0 = vector.load %arg0[%c0, %c0_0] : memref<16x32xf32, #tpu.memory_space<vmem>>, vector<16x32xf32>
    %c0_1 = arith.constant 0 : index
    %c0_2 = arith.constant 0 : index
    %1 = vector.load %arg1[%c0_1, %c0_2] : memref<16x16xf32, #tpu.memory_space<vmem>>, vector<16x16xf32>
    %c0_3 = arith.constant 0 : index
    %c0_4 = arith.constant 0 : index
    %2 = vector.load %arg2[%c0_3, %c0_4] : memref<32x32xf32, #tpu.memory_space<vmem>>, vector<32x32xf32>
    %cst = arith.constant dense<0.000000e+00> : vector<16x32xf32>
    %3 = tpu.matmul %0, %2, %cst {dimension_numbers = #tpu.dot_dimension_numbers<[1], [0], [0], [1], [0, 0, 1, 1], [], []>} : vector<16x32xf32>, vector<32x32xf32>, vector<16x32xf32> -> vector<16x32xf32>
    %c0_5 = arith.constant 0 : index
    %c0_6 = arith.constant 0 : index
    %4 = vector.load %arg3[%c0_5, %c0_6] : memref<1x32xf32, #tpu.memory_space<vmem>>, vector<1x32xf32>
    %5 = vector.broadcast %4 : vector<1x32xf32> to vector<16x32xf32>
    %6 = arith.addf %3, %5 : vector<16x32xf32>
    %c0_7 = arith.constant 0 : index
    %c0_8 = arith.constant 0 : index
    %7 = vector.load %arg4[%c0_7, %c0_8] : memref<32x32xf32, #tpu.memory_space<vmem>>, vector<32x32xf32>
    %cst_9 = arith.constant dense<0.000000e+00> : vector<16x32xf32>
    %8 = tpu.matmul %0, %7, %cst_9 {dimension_numbers = #tpu.dot_dimension_numbers<[1], [0], [0], [1], [0, 0, 1, 1], [], []>} : vector<16x32xf32>, vector<32x32xf32>, vector<16x32xf32> -> vector<16x32xf32>
    %c0_10 = arith.constant 0 : index
    %c0_11 = arith.constant 0 : index
    %9 = vector.load %arg5[%c0_10, %c0_11] : memref<1x32xf32, #tpu.memory_space<vmem>>, vector<1x32xf32>
    %10 = vector.broadcast %9 : vector<1x32xf32> to vector<16x32xf32>
    %11 = arith.addf %8, %10 : vector<16x32xf32>
    %c0_12 = arith.constant 0 : index
    %c0_13 = arith.constant 0 : index
    %12 = vector.load %arg6[%c0_12, %c0_13] : memref<32x32xf32, #tpu.memory_space<vmem>>, vector<32x32xf32>
    %cst_14 = arith.constant dense<0.000000e+00> : vector<16x32xf32>
    %13 = tpu.matmul %0, %12, %cst_14 {dimension_numbers = #tpu.dot_dimension_numbers<[1], [0], [0], [1], [0, 0, 1, 1], [], []>} : vector<16x32xf32>, vector<32x32xf32>, vector<16x32xf32> -> vector<16x32xf32>
    %c0_15 = arith.constant 0 : index
    %c0_16 = arith.constant 0 : index
    %14 = vector.load %arg7[%c0_15, %c0_16] : memref<1x32xf32, #tpu.memory_space<vmem>>, vector<1x32xf32>
    %15 = vector.broadcast %14 : vector<1x32xf32> to vector<16x32xf32>
    %16 = arith.addf %13, %15 : vector<16x32xf32>
    %17 = vector.extract_strided_slice %6 {offsets = [0, 0], sizes = [16, 8], strides = [1, 1]} : vector<16x32xf32> to vector<16x8xf32>
    %18 = vector.extract_strided_slice %6 {offsets = [0, 8], sizes = [16, 8], strides = [1, 1]} : vector<16x32xf32> to vector<16x8xf32>
    %19 = vector.extract_strided_slice %6 {offsets = [0, 16], sizes = [16, 8], strides = [1, 1]} : vector<16x32xf32> to vector<16x8xf32>
    %20 = vector.extract_strided_slice %6 {offsets = [0, 24], sizes = [16, 8], strides = [1, 1]} : vector<16x32xf32> to vector<16x8xf32>
    %21 = vector.shape_cast %17 : vector<16x8xf32> to vector<1x16x8xf32>
    %22 = vector.shape_cast %18 : vector<16x8xf32> to vector<1x16x8xf32>
    %23 = vector.shape_cast %19 : vector<16x8xf32> to vector<1x16x8xf32>
    %24 = vector.shape_cast %20 : vector<16x8xf32> to vector<1x16x8xf32>
    %25 = tpu.concatenate %21, %22, %23, %24 in 0 : vector<1x16x8xf32>, vector<1x16x8xf32>, vector<1x16x8xf32>, vector<1x16x8xf32> -> vector<4x16x8xf32>
    %26 = vector.extract_strided_slice %11 {offsets = [0, 0], sizes = [16, 8], strides = [1, 1]} : vector<16x32xf32> to vector<16x8xf32>
    %27 = vector.extract_strided_slice %11 {offsets = [0, 8], sizes = [16, 8], strides = [1, 1]} : vector<16x32xf32> to vector<16x8xf32>
    %28 = vector.extract_strided_slice %11 {offsets = [0, 16], sizes = [16, 8], strides = [1, 1]} : vector<16x32xf32> to vector<16x8xf32>
    %29 = vector.extract_strided_slice %11 {offsets = [0, 24], sizes = [16, 8], strides = [1, 1]} : vector<16x32xf32> to vector<16x8xf32>
    %30 = vector.shape_cast %26 : vector<16x8xf32> to vector<1x16x8xf32>
    %31 = vector.shape_cast %27 : vector<16x8xf32> to vector<1x16x8xf32>
    %32 = vector.shape_cast %28 : vector<16x8xf32> to vector<1x16x8xf32>
    %33 = vector.shape_cast %29 : vector<16x8xf32> to vector<1x16x8xf32>
    %34 = tpu.concatenate %30, %31, %32, %33 in 0 : vector<1x16x8xf32>, vector<1x16x8xf32>, vector<1x16x8xf32>, vector<1x16x8xf32> -> vector<4x16x8xf32>
    %35 = vector.extract_strided_slice %16 {offsets = [0, 0], sizes = [16, 8], strides = [1, 1]} : vector<16x32xf32> to vector<16x8xf32>
    %36 = vector.extract_strided_slice %16 {offsets = [0, 8], sizes = [16, 8], strides = [1, 1]} : vector<16x32xf32> to vector<16x8xf32>
    %37 = vector.extract_strided_slice %16 {offsets = [0, 16], sizes = [16, 8], strides = [1, 1]} : vector<16x32xf32> to vector<16x8xf32>
    %38 = vector.extract_strided_slice %16 {offsets = [0, 24], sizes = [16, 8], strides = [1, 1]} : vector<16x32xf32> to vector<16x8xf32>
    %39 = vector.shape_cast %35 : vector<16x8xf32> to vector<1x16x8xf32>
    %40 = vector.shape_cast %36 : vector<16x8xf32> to vector<1x16x8xf32>
    %41 = vector.shape_cast %37 : vector<16x8xf32> to vector<1x16x8xf32>
    %42 = vector.shape_cast %38 : vector<16x8xf32> to vector<1x16x8xf32>
    %43 = tpu.concatenate %39, %40, %41, %42 in 0 : vector<1x16x8xf32>, vector<1x16x8xf32>, vector<1x16x8xf32>, vector<1x16x8xf32> -> vector<4x16x8xf32>
    %cst_17 = arith.constant 0.000000e+00 : f32
    %44 = vector.broadcast %cst_17 : f32 to vector<16x16xf32>
    %45 = arith.cmpf oeq, %1, %44 : vector<16x16xf32>
    %cst_18 = arith.constant -1.000000e+09 : f32
    %cst_19 = arith.constant 0.000000e+00 : f32
    %46 = vector.broadcast %cst_18 : f32 to vector<16x16xf32>
    %47 = vector.broadcast %cst_19 : f32 to vector<16x16xf32>
    %48 = arith.select %45, %46, %47 : vector<16x16xi1>, vector<16x16xf32>
    %cst_20 = arith.constant 8.000000e+00 : f32
    %49 = math.sqrt %cst_20 : f32
    %cst_21 = arith.constant 1.000000e+00 : f32
    %50 = arith.divf %cst_21, %49 : f32
    "tpu.trace_start"() <{level = 10 : i32, message = "hqd,hkd->hqk"}> : () -> ()
    %cst_22 = arith.constant dense<0.000000e+00> : vector<4x16x16xf32>
    %51 = tpu.matmul %25, %34, %cst_22 {dimension_numbers = #tpu.dot_dimension_numbers<[2], [2], [1], [1], [0, 0, 0, 1, 1, 1], [0], [0]>} : vector<4x16x8xf32>, vector<4x16x8xf32>, vector<4x16x16xf32> -> vector<4x16x16xf32>
    "tpu.trace_stop"() : () -> ()
    %52 = vector.broadcast %50 : f32 to vector<4x16x16xf32>
    %53 = arith.mulf %51, %52 : vector<4x16x16xf32>
    %54 = vector.shape_cast %48 : vector<16x16xf32> to vector<1x16x16xf32>
    %55 = vector.broadcast %54 : vector<1x16x16xf32> to vector<4x16x16xf32>
    %56 = arith.addf %53, %55 : vector<4x16x16xf32>
    %cst_23 = arith.constant dense<0xFF800000> : vector<4x16xf32>
    %57 = vector.multi_reduction <maximumf>, %56, %cst_23 [2] : vector<4x16x16xf32> to vector<4x16xf32>
    %58 = vector.shape_cast %57 : vector<4x16xf32> to vector<4x16x1xf32>
    %59 = vector.broadcast %58 : vector<4x16x1xf32> to vector<4x16x16xf32>
    %60 = arith.subf %56, %59 : vector<4x16x16xf32>
    %61 = math.exp %60 : vector<4x16x16xf32>
    %cst_24 = arith.constant dense<0.000000e+00> : vector<4x16xf32>
    %62 = vector.multi_reduction <add>, %61, %cst_24 [2] : vector<4x16x16xf32> to vector<4x16xf32>
    %63 = vector.shape_cast %62 : vector<4x16xf32> to vector<4x16x1xf32>
    %64 = tpu.reciprocal %63 {approx = true} : vector<4x16x1xf32> -> vector<4x16x1xf32>
    %65 = vector.broadcast %64 : vector<4x16x1xf32> to vector<4x16x16xf32>
    %66 = arith.mulf %61, %65 : vector<4x16x16xf32>
    "tpu.trace_start"() <{level = 10 : i32, message = "hqk,hkd->hqd"}> : () -> ()
    %cst_25 = arith.constant dense<0.000000e+00> : vector<4x16x8xf32>
    %67 = tpu.matmul %66, %43, %cst_25 {dimension_numbers = #tpu.dot_dimension_numbers<[2], [1], [1], [2], [0, 0, 0, 1, 1, 2], [0], [0]>} : vector<4x16x16xf32>, vector<4x16x8xf32>, vector<4x16x8xf32> -> vector<4x16x8xf32>
    "tpu.trace_stop"() : () -> ()
    %c0_26 = arith.constant 0 : index
    %c0_27 = arith.constant 0 : index
    %c0_28 = arith.constant 0 : index
    %68 = vector.load %arg8[%c0_26, %c0_27, %c0_28] : memref<4x8x32xf32, #tpu.memory_space<vmem>>, vector<4x8x32xf32>
    "tpu.trace_start"() <{level = 10 : i32, message = "hnf,hfd->hnd"}> : () -> ()
    %cst_29 = arith.constant dense<0.000000e+00> : vector<4x16x32xf32>
    %69 = tpu.matmul %67, %68, %cst_29 {dimension_numbers = #tpu.dot_dimension_numbers<[2], [1], [1], [2], [0, 0, 0, 1, 1, 2], [0], [0]>} : vector<4x16x8xf32>, vector<4x8x32xf32>, vector<4x16x32xf32> -> vector<4x16x32xf32>
    "tpu.trace_stop"() : () -> ()
    %cst_30 = arith.constant dense<0.000000e+00> : vector<16x32xf32>
    %70 = vector.multi_reduction <add>, %69, %cst_30 [0] : vector<4x16x32xf32> to vector<16x32xf32>
    %c0_31 = arith.constant 0 : index
    %c0_32 = arith.constant 0 : index
    %71 = vector.load %arg9[%c0_31, %c0_32] : memref<1x32xf32, #tpu.memory_space<vmem>>, vector<1x32xf32>
    %72 = vector.broadcast %71 : vector<1x32xf32> to vector<16x32xf32>
    %73 = arith.addf %70, %72 : vector<16x32xf32>
    %c0_33 = arith.constant 0 : index
    %c0_34 = arith.constant 0 : index
    %74 = vector.load %arg10[%c0_33, %c0_34] : memref<1x32xf32, #tpu.memory_space<vmem>>, vector<1x32xf32>
    %c0_35 = arith.constant 0 : index
    %c0_36 = arith.constant 0 : index
    %75 = vector.load %arg11[%c0_35, %c0_36] : memref<1x32xf32, #tpu.memory_space<vmem>>, vector<1x32xf32>
    %76 = arith.addf %0, %73 : vector<16x32xf32>
    %cst_37 = arith.constant dense<0.000000e+00> : vector<16xf32>
    %77 = vector.multi_reduction <add>, %76, %cst_37 [1] : vector<16x32xf32> to vector<16xf32>
    %78 = vector.shape_cast %77 : vector<16xf32> to vector<16x1xf32>
    %cst_38 = arith.constant 3.200000e+01 : f32
    %79 = vector.broadcast %cst_38 : f32 to vector<16x1xf32>
    %80 = arith.divf %78, %79 : vector<16x1xf32>
    %81 = vector.broadcast %80 : vector<16x1xf32> to vector<16x32xf32>
    %82 = arith.subf %76, %81 : vector<16x32xf32>
    %83 = arith.mulf %82, %82 : vector<16x32xf32>
    %cst_39 = arith.constant dense<0.000000e+00> : vector<16xf32>
    %84 = vector.multi_reduction <add>, %83, %cst_39 [1] : vector<16x32xf32> to vector<16xf32>
    %85 = vector.shape_cast %84 : vector<16xf32> to vector<16x1xf32>
    %cst_40 = arith.constant 1.000000e+00 : f32
    %cst_41 = arith.constant 3.100000e+01 : f32
    %86 = arith.divf %cst_40, %cst_41 : f32
    %87 = vector.broadcast %86 : f32 to vector<16x1xf32>
    %88 = arith.mulf %85, %87 : vector<16x1xf32>
    %89 = math.sqrt %88 : vector<16x1xf32>
    %90 = vector.broadcast %80 : vector<16x1xf32> to vector<16x32xf32>
    %91 = arith.subf %76, %90 : vector<16x32xf32>
    %92 = vector.broadcast %74 : vector<1x32xf32> to vector<16x32xf32>
    %93 = arith.mulf %92, %91 : vector<16x32xf32>
    %cst_42 = arith.constant 9.99999974E-6 : f32
    %94 = vector.broadcast %cst_42 : f32 to vector<16x1xf32>
    %95 = arith.addf %89, %94 : vector<16x1xf32>
    %96 = vector.broadcast %95 : vector<16x1xf32> to vector<16x32xf32>
    %97 = arith.divf %93, %96 : vector<16x32xf32>
    %98 = vector.broadcast %75 : vector<1x32xf32> to vector<16x32xf32>
    %99 = arith.addf %97, %98 : vector<16x32xf32>
    %c0_43 = arith.constant 0 : index
    %c0_44 = arith.constant 0 : index
    %100 = vector.load %arg12[%c0_43, %c0_44] : memref<32x64xf32, #tpu.memory_space<vmem>>, vector<32x64xf32>
    %cst_45 = arith.constant dense<0.000000e+00> : vector<16x64xf32>
    %101 = tpu.matmul %99, %100, %cst_45 {dimension_numbers = #tpu.dot_dimension_numbers<[1], [0], [0], [1], [0, 0, 1, 1], [], []>} : vector<16x32xf32>, vector<32x64xf32>, vector<16x64xf32> -> vector<16x64xf32>
    %c0_46 = arith.constant 0 : index
    %c0_47 = arith.constant 0 : index
    %102 = vector.load %arg13[%c0_46, %c0_47] : memref<1x64xf32, #tpu.memory_space<vmem>>, vector<1x64xf32>
    %103 = vector.broadcast %102 : vector<1x64xf32> to vector<16x64xf32>
    %104 = arith.addf %101, %103 : vector<16x64xf32>
    %cst_48 = arith.constant 0.000000e+00 : f32
    %105 = vector.broadcast %cst_48 : f32 to vector<16x64xf32>
    %106 = arith.maximumf %104, %105 : vector<16x64xf32>
    %c0_49 = arith.constant 0 : index
    %c0_50 = arith.constant 0 : index
    %107 = vector.load %arg14[%c0_49, %c0_50] : memref<64x32xf32, #tpu.memory_space<vmem>>, vector<64x32xf32>
    %cst_51 = arith.constant dense<0.000000e+00> : vector<16x32xf32>
    %108 = tpu.matmul %106, %107, %cst_51 {dimension_numbers = #tpu.dot_dimension_numbers<[1], [0], [0], [1], [0, 0, 1, 1], [], []>} : vector<16x64xf32>, vector<64x32xf32>, vector<16x32xf32> -> vector<16x32xf32>
    %c0_52 = arith.constant 0 : index
    %c0_53 = arith.constant 0 : index
    %109 = vector.load %arg15[%c0_52, %c0_53] : memref<1x32xf32, #tpu.memory_space<vmem>>, vector<1x32xf32>
    %110 = vector.broadcast %109 : vector<1x32xf32> to vector<16x32xf32>
    %111 = arith.addf %108, %110 : vector<16x32xf32>
    %112 = arith.addf %99, %111 : vector<16x32xf32>
    %cst_54 = arith.constant dense<0.000000e+00> : vector<16xf32>
    %113 = vector.multi_reduction <add>, %112, %cst_54 [1] : vector<16x32xf32> to vector<16xf32>
    %114 = vector.shape_cast %113 : vector<16xf32> to vector<16x1xf32>
    %cst_55 = arith.constant 3.200000e+01 : f32
    %115 = vector.broadcast %cst_55 : f32 to vector<16x1xf32>
    %116 = arith.divf %114, %115 : vector<16x1xf32>
    %117 = vector.broadcast %116 : vector<16x1xf32> to vector<16x32xf32>
    %118 = arith.subf %112, %117 : vector<16x32xf32>
    %119 = arith.mulf %118, %118 : vector<16x32xf32>
    %cst_56 = arith.constant dense<0.000000e+00> : vector<16xf32>
    %120 = vector.multi_reduction <add>, %119, %cst_56 [1] : vector<16x32xf32> to vector<16xf32>
    %121 = vector.shape_cast %120 : vector<16xf32> to vector<16x1xf32>
    %cst_57 = arith.constant 1.000000e+00 : f32
    %cst_58 = arith.constant 3.100000e+01 : f32
    %122 = arith.divf %cst_57, %cst_58 : f32
    %123 = vector.broadcast %122 : f32 to vector<16x1xf32>
    %124 = arith.mulf %121, %123 : vector<16x1xf32>
    %125 = math.sqrt %124 : vector<16x1xf32>
    %126 = vector.broadcast %116 : vector<16x1xf32> to vector<16x32xf32>
    %127 = arith.subf %112, %126 : vector<16x32xf32>
    %128 = vector.broadcast %74 : vector<1x32xf32> to vector<16x32xf32>
    %129 = arith.mulf %128, %127 : vector<16x32xf32>
    %cst_59 = arith.constant 9.99999974E-6 : f32
    %130 = vector.broadcast %cst_59 : f32 to vector<16x1xf32>
    %131 = arith.addf %125, %130 : vector<16x1xf32>
    %132 = vector.broadcast %131 : vector<16x1xf32> to vector<16x32xf32>
    %133 = arith.divf %129, %132 : vector<16x32xf32>
    %134 = vector.broadcast %75 : vector<1x32xf32> to vector<16x32xf32>
    %135 = arith.addf %133, %134 : vector<16x32xf32>
    %c0_60 = arith.constant 0 : index
    %c0_61 = arith.constant 0 : index
    %136 = vector.load %arg16[%c0_60, %c0_61] : memref<16x32xf32, #tpu.memory_space<vmem>>, vector<16x32xf32>
    tpu.vector_store %arg16[%c0_60, %c0_61], %135 {strides = array<i32>} : memref<16x32xf32, #tpu.memory_space<vmem>>, vector<16x32xf32>,
    return
  }
}

</mosaic_0001>

<bundles_post_ra>
// kernel: tpu_custom_call.1
= control target key start
LH: loop header
LB: loop body
LE: loop exit
PB: predicated region body
PF: predicated region fallthrough
CT: control target
= control target key end

     0   :  { %s2648_s0 = inlined_call_operand.hbm [shape: f32[16,32], index: 0, kind: input, shape index: {}]   ;;  %s2649_s1 = inlined_call_operand.hbm [shape: f32[16,16], index: 1, kind: input, shape index: {}]   ;;  %s2650_s2 = inlined_call_operand.vmem [shape: f32[32,32], index: 2, kind: input, shape index: {}]   ;;  %s2651_s3 = inlined_call_operand.vmem [shape: f32[1,32], index: 3, kind: input, shape index: {}]   ;;  %s2652_s4 = inlined_call_operand.vmem [shape: f32[32,32], index: 4, kind: input, shape index: {}]   ;;  %s2653_s5 = inlined_call_operand.vmem [shape: f32[1,32], index: 5, kind: input, shape index: {}]   ;;  %s2654_s6 = inlined_call_operand.vmem [shape: f32[32,32], index: 6, kind: input, shape index: {}]   ;;  %s2655_s7 = inlined_call_operand.vmem [shape: f32[1,32], index: 7, kind: input, shape index: {}]   ;;  %s2656_s8 = inlined_call_operand.hbm [shape: f32[4,8,32], index: 8, kind: input, shape index: {}]   ;;  %s2657_s9 = inlined_call_operand.vmem [shape: f32[1,32], index: 9, kind: input, shape index: {}]   ;;  %s2658_s10 = inlined_call_operand.vmem [shape: f32[1,32], index: 10, kind: input, shape index: {}]   ;;  %s2659_s11 = inlined_call_operand.vmem [shape: f32[1,32], index: 11, kind: input, shape index: {}]   ;;  %s2660_s12 = inlined_call_operand.hbm [shape: f32[32,64], index: 12, kind: input, shape index: {}]   ;;  %s2661_s13 = inlined_call_operand.vmem [shape: f32[1,64], index: 13, kind: input, shape index: {}]   ;;  %s2662_s14 = inlined_call_operand.vmem [shape: f32[64,32], index: 14, kind: input, shape index: {}]   ;;  %s2663_s15 = inlined_call_operand.vmem [shape: f32[1,32], index: 15, kind: input, shape index: {}]   ;;  %s2664_s16 = inlined_call_operand.hbm [shape: f32[16,32], index: 16, kind: output, shape index: {}]  }
   0x1   :  { %2665 = sst [smem:[#allocation15_spill]] %s2648_s0 }
   0x2   :  { %21 = vsyncpa [#allocation3], 0 }
   0x3   :  { %22 = vsyncpa [#allocation6], 0 }
   0x4   :  { %23 = vsyncpa [#allocation9], 0 }
   0x5   :  { %24 = vsyncpa [#allocation4], 0  ;;  %s2296_s21 = smov [#allocation5]   ;;  %s2297_s23 = smov [#allocation2]  }
   0x6   :  { %s42_s22 = sshll.u32 %s2296_s21, 4  ;;  %s30_s24 = sshll.u32 %s2297_s23, 4  ;;  %s43_s22 = int_to_ptr.vmem [resolvable:$true] %s42_s22  ;;  %s31_s24 = int_to_ptr.vmem [resolvable:$true] %s30_s24 }
   0x7   :  { %s2196_s25 = scalar_lea.vmem %s43_s22, 256  ;;  %p2201_p1 = scmp.lt.s32.totalorder %s43_s22, %s43_s22 }
   0x8   :  { %p2197_p0 = scmp.ne.s32.totalorder %s43_s22, %s2196_s25  ;;  %p2202_p2 = scmp.lt.s32.totalorder %s2196_s25, %s2196_s25 }
   0xa   :  { %p2203_p3 = por %p2202_p2, %p2201_p1 }
   0xc   :  { %p2204_p4 = pnand %p2203_p3, %p2197_p0 }
   0xe   :  { %2207 = shalt.err (!%p2204_p4)
}
   0xf   :  { %s2298_s26 = smov 128   ;;  %s2299_s27 = smov 8  }
  0x10   :  { %48 = dma.hbm_to_vmem [thread:$0]  %s2649_s1, 256, %s43_s22, [#allocation6], %s2298_s26, %s2298_s26, %s2299_s27  }
  0x11   :  { %s2216_s30 = scalar_lea.vmem %s31_s24, 256  ;;  %p2221_p6 = scmp.lt.s32.totalorder %s31_s24, %s31_s24 }
  0x12   :  { %p2217_p5 = scmp.ne.s32.totalorder %s31_s24, %s2216_s30  ;;  %p2222_p7 = scmp.lt.s32.totalorder %s2216_s30, %s2216_s30 }
  0x14   :  { %p2223_p8 = por %p2222_p7, %p2221_p6 }
  0x16   :  { %p2224_p9 = pnand %p2223_p8, %p2217_p5 }
  0x18   :  { %2227 = shalt.err (!%p2224_p9)
}
  0x19   :  { %s2666_s18 = sld [smem:[#allocation15_spill]]  ;;  %s2300_s19 = smov [#allocation7]  }
  0x1a   :  { %s66_s20 = sshll.u32 %s2300_s19, 4  ;;  %s2301_s21 = smov [#allocation8]   ;;  %s67_s20 = int_to_ptr.vmem [resolvable:$true] %s66_s20 }
  0x1b   :  { %s84_s23 = sshll.u32 %s2301_s21, 4  ;;  %s2236_s1 = scalar_lea.vmem %s67_s20, 512  ;;  %s85_s23 = int_to_ptr.vmem [resolvable:$true] %s84_s23 }
  0x1c   :  { %p2237_p10 = scmp.ne.s32.totalorder %s67_s20, %s2236_s1  ;;  %p2241_p11 = scmp.lt.s32.totalorder %s67_s20, %s67_s20 }
  0x1d   :  { %p2242_p12 = scmp.lt.s32.totalorder %s2236_s1, %s2236_s1 }
  0x1f   :  { %36 = dma.hbm_to_vmem [thread:$0]  %s2666_s18, 256, %s31_s24, [#allocation3], %s2298_s26, %s2298_s26, %s2299_s27  }
  0x20   :  { %p2243_p13 = por %p2242_p12, %p2241_p11 }
  0x22   :  { %p2244_p0 = pnand %p2243_p13, %p2237_p10 }
  0x24   :  { %2247 = shalt.err (!%p2244_p0)
}
  0x25   :  { %72 = dma.hbm_to_vmem [thread:$0]  %s2656_s8, 512, %s67_s20, [#allocation6], %s2298_s26, %s2298_s26, %s2299_s27  }
  0x26   :  { %s2256_s24 = scalar_lea.vmem %s85_s23, 512  ;;  %p2261_p2 = scmp.lt.s32.totalorder %s85_s23, %s85_s23 }
  0x27   :  { %p2257_p1 = scmp.ne.s32.totalorder %s85_s23, %s2256_s24  ;;  %p2262_p3 = scmp.lt.s32.totalorder %s2256_s24, %s2256_s24 }
  0x29   :  { %p2263_p4 = por %p2262_p3, %p2261_p2 }
  0x2b   :  { %p2264_p5 = pnand %p2263_p4, %p2257_p1 }
  0x2d   :  { %2267 = shalt.err (!%p2264_p5)
}
  0x2e   :  { %90 = dma.hbm_to_vmem [thread:$0]  %s2660_s12, 512, %s85_s23, [#allocation9], %s2298_s26, %s2298_s26, %s2299_s27  }
  0x2f   :  { %2288 = dma.done.wait [#allocation3], 256  }
  0x30   :  { %2289 = vsyncadd [#allocation3], 4294967040 }
  0x31   :  { %2290 = dma.done.wait [#allocation6], 768  }
  0x32   :  { %2291 = vsyncadd [#allocation6], 4294966528 }
  0x33   :  { %2292 = dma.done.wait [#allocation9], 512  }
  0x34   :  { %2293 = vsyncadd [#allocation9], 4294966784  ;;  %v209_v0 = vld [vmem:[%s2652_s4 + $0x18] sm:$0xff]  ;;  %v208_v2 = vld [vmem:[%s2652_s4 + $0x10] sm:$0xff]  ;;  %vm124_vm0 = vcmask 261120   ;;  %vm430_vm1 = vcmask 64512  }
  0x35   :  { %v116_v1 = vld [vmem:[%s2650_s2 + $0x18] sm:$0xff]  ;;  %2001 = vmatprep.subr.mxu1 %v209_v0  ;;  %v115_v3 = vld [vmem:[%s2650_s2 + $0x10] sm:$0xff]  ;;  %v207_v4 = vld [vmem:[%s2652_s4 + $0x8] sm:$0xff]  ;;  %s2303_s1 = smov 120   ;;  %v2305_v44 = vmov 0.0   ;;  %vm779_vm4 = vcmask 130048  }
  0x36   :  { %1990 = vmatprep.subr.mxu0 %v116_v1  ;;  %2002 = vmatpush3.msra.mxu1 %v209_v0  ;;  %v114_v5 = vld [vmem:[%s2650_s2 + $0x8] sm:$0xff]  ;;  %v206_v6 = vld [vmem:[%s2652_s4] sm:$0xff]  ;;  %v295_v10 = vld [vmem:[%s2654_s6 + $0x18] sm:$0xff]  ;;  %vm1713_vm9 = vcmask 523264  }
  0x37   :  { %1991 = vmatpush3.msra.mxu0 %v116_v1  ;;  %2003 = vmatprep.subr.mxu1 %v208_v2  ;;  %v2437_v7 = vld [vmem:[#allocation2] sm:$0xff]  ;;  %v2442_v9 = vld [vmem:[#allocation2 + $0x8] sm:$0xff]  ;;  %v294_v11 = vld [vmem:[%s2654_s6 + $0x10] sm:$0xff] }
  0x38   :  { %1992 = vmatprep.subr.mxu0 %v115_v3  ;;  %2004 = vmatpush3.msra.mxu1 %v208_v2  ;;  %v113_v8 = vld [vmem:[%s2650_s2] sm:$0xff]  ;;  %v293_v12 = vld [vmem:[%s2654_s6 + $0x8] sm:$0xff]  ;;  %v112_v41 = vld [vmem:[#allocation5 + $0x8] sm:$0xff] }
  0x39   :  { %1993 = vmatpush3.msra.mxu0 %v115_v3  ;;  %2005 = vmatprep.subr.mxu1 %v207_v4  ;;  %v292_v13 = vld [vmem:[%s2654_s6] sm:$0xff]  ;;  %s2302_s6 = smov 112   ;;  %v111_v42 = vld [vmem:[#allocation5] sm:$0xff]  ;;  %vm427_vm2 = vcmp.eq.f32.partialorder %v112_v41, 0.0 }
  0x3a   :  { %1994 = vmatprep.subr.mxu0 %v114_v5  ;;  %2006 = vmatpush3.msra.mxu1 %v207_v4  ;;  %v1865_v14 = vld [vmem:[%s2653_s5] ss:$0 sm:$0xff]  ;;  %vm426_vm3 = vcmp.eq.f32.partialorder %v111_v42, 0.0  ;;  %v429_v45 = vsel %vm427_vm2, -1e+09, %v2305_v44 }
  0x3b   :  { %1995 = vmatpush3.msra.mxu0 %v114_v5  ;;  %2007 = vmatprep.subr.mxu1 %v206_v6  ;;  %v1862_v16 = vld [vmem:[%s2651_s3] ss:$0 sm:$0xff]  ;;  %s2304_s3 = smov 104   ;;  %v428_v48 = vsel %vm426_vm3, -1e+09, %v2305_v44 }
  0x3c   :  { %2009 = vmatprep.mubr.msk.f32.mxu1 %vm124_vm0, %v2437_v7  ;;  %2008 = vmatpush3.msra.mxu1 %v206_v6  ;;  %v1868_v33 = vld [vmem:[%s2655_s7] ss:$0 sm:$0xff] }
  0x3d   :  { %1996 = vmatprep.subr.mxu0 %v113_v8  ;;  %2010 = vmatmul.mubr.msk.f32.vlgmr.msra.gmra.mxu1 %vm124_vm0, %v2442_v9 }
  0x3e   :  { %1997 = vmatpush3.msra.mxu0 %v113_v8  ;;  %1998 = vmatprep.mubr.msk.f32.mxu0 %vm124_vm0, %v2437_v7 }
  0x3f   :  { %1999 = vmatmul.mubr.msk.f32.vlgmr.msra.gmra.mxu0 %vm124_vm0, %v2442_v9  ;;  %2012 = vmatprep.subr.mxu0 %v295_v10 }
  0x40   :  { %2020 = vmatprep.mubr.msk.f32.mxu0 %vm124_vm0, %v2437_v7  ;;  %2013 = vmatpush3.msra.mxu0 %v295_v10 }
  0x41   :  { %2014 = vmatprep.subr.mxu0 %v294_v11 }
  0x42   :  { %2015 = vmatpush3.msra.mxu0 %v294_v11 }
  0x43   :  { %2016 = vmatprep.subr.mxu0 %v293_v12 }
  0x44   :  { %2017 = vmatpush3.msra.mxu0 %v293_v12 }
  0x45   :  { %2018 = vmatprep.subr.mxu0 %v292_v13 }
  0x46   :  { %2019 = vmatpush3.msra.mxu0 %v292_v13 }
  0x47   :  { %2021 = vmatmul.mubr.msk.f32.vlgmr.msra.gmra.mxu0 %vm124_vm0, %v2442_v9 }
  0xfd   :  { %v2011_v15 = vpop.f32.mrf.mxu1 }
  0xfe   :  { %v289_v17 = vadd.f32 %v2011_v15, %v1865_v14 }
  0xff   :  { %v2000_v18 = vpop.f32.mrf.mxu0  ;;  %v283_v19 = vpop.f32.mrf.mxu1 }
 0x100   :  { %v203_v20 = vadd.f32 %v2000_v18, %v1862_v16  ;;  %v284_v21 = vadd.f32 %v1865_v14, %v283_v19  ;;  %400 = vrot.lane.b32.xlu1 %v289_v17, %s2302_s6  ;;  %396 = vrot.lane.b32.xlu0 %v289_v17, %s2303_s1 }
 0x101   :  { %2023 = vmatprep.subr.msk.mxu1 %vm430_vm1, %v289_v17  ;;  %v197_v22 = vpop.f32.mrf.mxu0 }
 0x102   :  { %v198_v23 = vadd.f32 %v1862_v16, %v197_v22  ;;  %2024 = vmatpush3.xpose.msk.msra.mxu1 %vm430_vm1, %v289_v17 }
 0x103   :  { %2025 = vmatprep.subr.msk.mxu1 %vm430_vm1, %v284_v21 }
 0x104   :  { %404 = vrot.lane.b32.xlu0 %v289_v17, %s2304_s3  ;;  %382 = vrot.lane.b32.xlu1 %v203_v20, %s2303_s1 }
 0x105   :  { %2027 = vmatprep.mubr.msk.f32.mxu1 %vm430_vm1, %v198_v23 }
 0x106   :  { %2026 = vmatpush3.xpose.msk.msra.mxu1 %vm430_vm1, %v284_v21 }
 0x107   :  { %v2022_v32 = vpop.f32.mrf.mxu0 }
 0x108   :  { %394 = vrot.lane.b32.xlu0 %v284_v21, %s2303_s1  ;;  %386 = vrot.lane.b32.xlu1 %v203_v20, %s2302_s6  ;;  %v2507_v36 = vadd.f32 %v2022_v32, %v1868_v33 }
 0x109   :  { %2028 = vmatmul.mubr.msk.f32.vlgmr.msra.gmra.mxu1 %vm430_vm1, %v203_v20  ;;  %v369_v37 = vpop.f32.mrf.mxu0 }
 0x10a   :  { %v2513_v40 = vadd.f32 %v1868_v33, %v369_v37 }
 0x10c   :  { %398 = vrot.lane.b32.xlu0 %v284_v21, %s2302_s6  ;;  %380 = vrot.lane.b32.xlu1 %v198_v23, %s2303_s1 }
 0x110   :  { %384 = vrot.lane.b32.xlu0 %v198_v23, %s2302_s6  ;;  %402 = vrot.lane.b32.xlu1 %v284_v21, %s2304_s3 }
 0x114   :  { %388 = vrot.lane.b32.xlu0 %v198_v23, %s2304_s3  ;;  %390 = vrot.lane.b32.xlu1 %v203_v20, %s2304_s3 }
 0x172   :  { %v401_v24 = vpop.permute.xlu1 %400  ;;  %v397_v25 = vpop.permute.xlu0 %396 }
 0x173   :  { %2030 = vmatprep.subr.msk.mxu0 %vm430_vm1, %v397_v25  ;;  %2037 = vmatprep.subr.msk.mxu1 %vm430_vm1, %v401_v24 }
 0x174   :  { %2031 = vmatpush3.xpose.msk.msra.mxu0 %vm430_vm1, %v397_v25  ;;  %2038 = vmatpush3.xpose.msk.msra.mxu1 %vm430_vm1, %v401_v24 }
 0x176   :  { %v405_v26 = vpop.permute.xlu0 %404  ;;  %v383_v27 = vpop.permute.xlu1 %382 }
 0x17a   :  { %v395_v28 = vpop.permute.xlu0 %394  ;;  %v387_v29 = vpop.permute.xlu1 %386 }
 0x17b   :  { %2032 = vmatprep.subr.msk.mxu0 %vm430_vm1, %v395_v28 }
 0x17c   :  { %2033 = vmatpush3.xpose.msk.msra.mxu0 %vm430_vm1, %v395_v28 }
 0x17d   :  { %2044 = vmatprep.subr.msk.mxu0 %vm430_vm1, %v405_v26 }
 0x17e   :  { %v399_v30 = vpop.permute.xlu0 %398  ;;  %v381_v31 = vpop.permute.xlu1 %380 }
 0x17f   :  { %2034 = vmatprep.mubr.msk.f32.mxu0 %vm430_vm1, %v381_v31  ;;  %2039 = vmatprep.subr.msk.mxu1 %vm430_vm1, %v399_v30 }
 0x180   :  { %2035 = vmatmul.mubr.msk.f32.vlgmr.msra.gmra.mxu0 %vm430_vm1, %v383_v27  ;;  %2040 = vmatpush3.xpose.msk.msra.mxu1 %vm430_vm1, %v399_v30 }
 0x181   :  { %2045 = vmatpush3.xpose.msk.msra.mxu0 %vm430_vm1, %v405_v26 }
 0x182   :  { %v385_v34 = vpop.permute.xlu0 %384  ;;  %v403_v35 = vpop.permute.xlu1 %402 }
 0x183   :  { %2041 = vmatprep.mubr.msk.f32.mxu1 %vm430_vm1, %v385_v34  ;;  %2046 = vmatprep.subr.msk.mxu0 %vm430_vm1, %v403_v35 }
 0x184   :  { %2042 = vmatmul.mubr.msk.f32.vlgmr.msra.gmra.mxu1 %vm430_vm1, %v387_v29 }
 0x185   :  { %2047 = vmatpush3.xpose.msk.msra.mxu0 %vm430_vm1, %v403_v35 }
 0x186   :  { %v389_v38 = vpop.permute.xlu0 %388  ;;  %v391_v39 = vpop.permute.xlu1 %390  ;;  %2051 = vmatprep.subr.mxu0 %v2507_v36 }
 0x187   :  { %2048 = vmatprep.mubr.msk.f32.mxu0 %vm430_vm1, %v389_v38 }
 0x188   :  { %2049 = vmatmul.mubr.msk.f32.vlgmr.msra.gmra.mxu0 %vm430_vm1, %v391_v39 }
 0x189   :  { %2052 = vmatpush3.msra.mxu0 %v2507_v36 }
 0x18a   :  { %2053 = vmatprep.subr.mxu0 %v2513_v40 }
 0x18b   :  { %2054 = vmatpush3.msra.mxu0 %v2513_v40 }
 0x1c9   :  { %v2029_v43 = vpop.f32.mrf.mxu1 }
 0x1ca   :  { %v764_v46 = vmul.f32 0.35355338, %v2029_v43 }
 0x1cb   :  { %v505_v47 = vpop.f32.mrf.mxu1 }
 0x1cc   :  { %v763_v49 = vmul.f32 0.35355338, %v505_v47  ;;  %v772_v50 = vadd.f32 %v764_v46, %v429_v45 }
 0x1ce   :  { %v783_v51 = vsel %vm779_vm4, %v772_v50, -inf  ;;  %v771_v52 = vadd.f32 %v763_v49, %v428_v48 }
 0x1cf   :  { %784 = vmax.xlane.f32.xlu1 %v783_v51 }
 0x1d0   :  { %v780_v53 = vsel %vm779_vm4, %v771_v52, -inf }
 0x1d1   :  { %781 = vmax.xlane.f32.xlu0 %v780_v53 }
 0x240   :  { %v2036_v54 = vpop.f32.mrf.mxu0 }
 0x241   :  { %v766_v55 = vmul.f32 0.35355338, %v2036_v54 }
 0x242   :  { %v588_v56 = vpop.f32.mrf.mxu0 }
 0x243   :  { %v765_v57 = vmul.f32 0.35355338, %v588_v56  ;;  %v774_v58 = vadd.f32 %v766_v55, %v429_v45 }
 0x244   :  { %v2043_v59 = vpop.f32.mrf.mxu1 }
 0x245   :  { %v768_v60 = vmul.f32 0.35355338, %v2043_v59  ;;  %v789_v61 = vsel %vm779_vm4, %v774_v58, -inf  ;;  %v773_v62 = vadd.f32 %v765_v57, %v428_v48 }
 0x246   :  { %790 = vmax.xlane.f32.xlu0 %v789_v61  ;;  %v671_v63 = vpop.f32.mrf.mxu1 }
 0x247   :  { %v767_v0 = vmul.f32 0.35355338, %v671_v63  ;;  %v786_v3 = vsel %vm779_vm4, %v773_v62, -inf  ;;  %v776_v5 = vadd.f32 %v768_v60, %v429_v45 }
 0x248   :  { %v2050_v1 = vpop.f32.mrf.mxu0 }
 0x249   :  { %v770_v2 = vmul.f32 0.35355338, %v2050_v1  ;;  %v775_v4 = vadd.f32 %v767_v0, %v428_v48  ;;  %v795_v11 = vsel %vm779_vm4, %v776_v5, -inf }
 0x24a   :  { %v754_v6 = vpop.f32.mrf.mxu0  ;;  %787 = vmax.xlane.f32.xlu0 %v786_v3 }
 0x24b   :  { %v769_v8 = vmul.f32 0.35355338, %v754_v6  ;;  %v792_v10 = vsel %vm779_vm4, %v775_v4, -inf  ;;  %v778_v13 = vadd.f32 %v770_v2, %v429_v45 }
 0x24c   :  { %793 = vmax.xlane.f32.xlu1 %v792_v10 }
 0x24d   :  { %v777_v12 = vadd.f32 %v769_v8, %v428_v48  ;;  %v801_v15 = vsel %vm779_vm4, %v778_v13, -inf }
 0x24e   :  { %796 = vmax.xlane.f32.xlu0 %v795_v11 }
 0x24f   :  { %v798_v14 = vsel %vm779_vm4, %v777_v12, -inf }
 0x250   :  { %799 = vmax.xlane.f32.xlu1 %v798_v14 }
 0x252   :  { %802 = vmax.xlane.f32.xlu0 %v801_v15 }
 0x258   :  { %v785_v16 = vpop.xlane.xlu1 %784 }
 0x259   :  { %v805_v17 = vsub.f32 %v772_v50, %v785_v16 }
 0x25a   :  { %v782_v18 = vpop.xlane.xlu0 %781 }
 0x25b   :  { %v814_v19 = vmul.f32 1.442695, %v805_v17  ;;  %v804_v20 = vsub.f32 %v771_v52, %v782_v18 }
 0x25d   :  { %2140 = vpow2.f32 %v814_v19  ;;  %v812_v21 = vmul.f32 1.442695, %v804_v20 }
 0x25f   :  { %2142 = vpow2.f32 %v812_v21 }
 0x261   :  { %410 = vrot.lane.b32.xlu1 %v2507_v36, %s2303_s1 }
 0x265   :  { %416 = vrot.lane.b32.xlu1 %v2507_v36, %s2302_s6 }
 0x268   :  { %408 = vrot.lane.b32.xlu0 %v2513_v40, %s2303_s1 }
 0x269   :  { %414 = vrot.lane.b32.xlu1 %v2513_v40, %s2302_s6 }
 0x26a   :  { %v2537_v22 = vpop.eup %2140 }
 0x26b   :  { %v831_v23 = vsel %vm779_vm4, %v2537_v22, 0.0 }
 0x26c   :  { %v2143_v24 = vpop.eup %2142 }
 0x26d   :  { %v828_v25 = vsel %vm779_vm4, %v2143_v24, 0.0 }
 0x287   :  { %832 = vadd.xlane.f32.xlu0 %v831_v23 }
 0x28d   :  { %829 = vadd.xlane.f32.xlu1 %v828_v25  ;;  %v1193_v25 = vld [vmem:[#allocation7 + $0x8] sm:$0xff] }
 0x2cf   :  { %v791_v26 = vpop.xlane.xlu0 %790 }
 0x2d0   :  { %v807_v27 = vsub.f32 %v774_v58, %v791_v26  ;;  %v1194_v26 = vld [vmem:[#allocation7 + $0x10] sm:$0xff] }
 0x2d2   :  { %v818_v28 = vmul.f32 1.442695, %v807_v27  ;;  %v1195_v27 = vld [vmem:[#allocation7 + $0x18] sm:$0xff] }
 0x2d3   :  { %v788_v29 = vpop.xlane.xlu0 %787 }
 0x2d4   :  { %2144 = vpow2.f32 %v818_v28  ;;  %v806_v30 = vsub.f32 %v773_v62, %v788_v29 }
 0x2d5   :  { %v794_v31 = vpop.xlane.xlu1 %793 }
 0x2d6   :  { %v816_v32 = vmul.f32 1.442695, %v806_v30  ;;  %v808_v33 = vsub.f32 %v775_v4, %v794_v31 }
 0x2d7   :  { %v797_v34 = vpop.xlane.xlu0 %796 }
 0x2d8   :  { %2146 = vpow2.f32 %v816_v32  ;;  %v820_v35 = vmul.f32 1.442695, %v808_v33  ;;  %v809_v37 = vsub.f32 %v776_v5, %v797_v34 }
 0x2d9   :  { %v800_v38 = vpop.xlane.xlu1 %799 }
 0x2da   :  { %2148 = vpow2.f32 %v820_v35  ;;  %v822_v39 = vmul.f32 1.442695, %v809_v37  ;;  %v810_v41 = vsub.f32 %v777_v12, %v800_v38 }
 0x2db   :  { %v803_v42 = vpop.xlane.xlu0 %802 }
 0x2dc   :  { %2150 = vpow2.f32 %v822_v39  ;;  %v824_v43 = vmul.f32 1.442695, %v810_v41  ;;  %v811_v44 = vsub.f32 %v778_v13, %v803_v42 }
 0x2dd   :  { %v411_v45 = vpop.permute.xlu1 %410 }
 0x2de   :  { %2152 = vpow2.f32 %v824_v43  ;;  %v826_v46 = vmul.f32 1.442695, %v811_v44  ;;  %2058 = vmatprep.subr.mxu1 %v411_v45 }
 0x2df   :  { %v409_v47 = vpop.permute.xlu0 %408  ;;  %2059 = vmatpush3.msra.mxu1 %v411_v45 }
 0x2e0   :  { %2154 = vpow2.f32 %v826_v46  ;;  %2060 = vmatprep.subr.mxu1 %v409_v47 }
 0x2e1   :  { %v2145_v48 = vpop.eup %2144  ;;  %2061 = vmatpush3.msra.mxu1 %v409_v47  ;;  %v417_v49 = vpop.permute.xlu1 %416 }
 0x2e2   :  { %2065 = vmatprep.subr.mxu0 %v417_v49  ;;  %v837_v50 = vsel %vm779_vm4, %v2145_v48, 0.0 }
 0x2e3   :  { %838 = vadd.xlane.f32.xlu0 %v837_v50 }
 0x2e5   :  { %v2147_v51 = vpop.eup %2146  ;;  %v415_v61 = vpop.permute.xlu1 %414 }
 0x2e6   :  { %v834_v52 = vsel %vm779_vm4, %v2147_v51, 0.0 }
 0x2e7   :  { %v2149_v53 = vpop.eup %2148  ;;  %835 = vadd.xlane.f32.xlu1 %v834_v52 }
 0x2e8   :  { %v840_v56 = vsel %vm779_vm4, %v2149_v53, 0.0 }
 0x2e9   :  { %v2151_v54 = vpop.eup %2150 }
 0x2ea   :  { %v843_v55 = vsel %vm779_vm4, %v2151_v54, 0.0 }
 0x2eb   :  { %v2153_v57 = vpop.eup %2152  ;;  %844 = vadd.xlane.f32.xlu0 %v843_v55  ;;  %841 = vadd.xlane.f32.xlu1 %v840_v56  ;;  %v1903_v55 = vld [vmem:[%s2657_s9] ss:$0 sm:$0xff] }
 0x2ec   :  { %v846_v60 = vsel %vm779_vm4, %v2153_v57, 0.0 }
 0x2ed   :  { %v2155_v58 = vpop.eup %2154 }
 0x2ee   :  { %v849_v59 = vsel %vm779_vm4, %v2155_v58, 0.0 }
 0x2ef   :  { %850 = vadd.xlane.f32.xlu0 %v849_v59  ;;  %847 = vadd.xlane.f32.xlu1 %v846_v60 }
 0x300   :  { %420 = vrot.lane.b32.xlu1 %v2513_v40, %s2304_s3  ;;  %v1192_v40 = vld [vmem:[#allocation7] sm:$0xff] }
 0x305   :  { %422 = vrot.lane.b32.xlu0 %v2507_v36, %s2304_s3 }
 0x310   :  { %v833_v62 = vpop.xlane.xlu0 %832 }
 0x311   :  { %2156 = vrcp.f32 %v833_v62 }
 0x316   :  { %v830_v63 = vpop.xlane.xlu1 %829 }
 0x317   :  { %2158 = vrcp.f32 %v830_v63 }
 0x31e   :  { %v2157_v0 = vpop.eup %2156 }
 0x31f   :  { %v861_v3 = vmul.f32 %v2157_v0, %v2537_v22 }
 0x324   :  { %v2159_v1 = vpop.eup %2158 }
 0x325   :  { %v860_v2 = vmul.f32 %v2159_v1, %v2143_v24 }
 0x327   :  { %2055 = vmatprep.mubr.msk.f32.mxu0 %vm779_vm4, %v860_v2 }
 0x328   :  { %2056 = vmatmul.mubr.msk.f32.vlgmr.msra.gmra.mxu0 %vm779_vm4, %v861_v3 }
 0x329   :  { %2066 = vmatpush3.msra.mxu0 %v417_v49 }
 0x32a   :  { %2067 = vmatprep.subr.mxu0 %v415_v61 }
 0x32b   :  { %2068 = vmatpush3.msra.mxu0 %v415_v61 }
 0x32c   :  { %2079 = vmatprep.subr.mxu0 %v1192_v40 }
 0x36c   :  { %v839_v36 = vpop.xlane.xlu0 %838 }
 0x36d   :  { %2160 = vrcp.f32 %v839_v36 }
 0x370   :  { %v836_v4 = vpop.xlane.xlu1 %835 }
 0x371   :  { %2162 = vrcp.f32 %v836_v4 }
 0x374   :  { %v845_v5 = vpop.xlane.xlu0 %844  ;;  %v842_v6 = vpop.xlane.xlu1 %841 }
 0x375   :  { %2164 = vrcp.f32 %v845_v5 }
 0x376   :  { %2166 = vrcp.f32 %v842_v6 }
 0x378   :  { %v851_v8 = vpop.xlane.xlu0 %850  ;;  %v848_v10 = vpop.xlane.xlu1 %847 }
 0x379   :  { %2168 = vrcp.f32 %v851_v8 }
 0x37a   :  { %2170 = vrcp.f32 %v848_v10  ;;  %v2161_v12 = vpop.eup %2160 }
 0x37b   :  { %v863_v15 = vmul.f32 %v2161_v12, %v2145_v48  ;;  %v1607_v12 = vld [vmem:[#allocation8 + $0x18] sm:$0xff] }
 0x37c   :  { %v423_v11 = vpop.permute.xlu0 %422  ;;  %v421_v18 = vpop.permute.xlu1 %420 }
 0x37d   :  { %2072 = vmatprep.subr.mxu1 %v423_v11 }
 0x37e   :  { %v2163_v13 = vpop.eup %2162 }
 0x37f   :  { %v862_v14 = vmul.f32 %v2163_v13, %v2147_v51  ;;  %v1605_v13 = vld [vmem:[#allocation8 + $0x8] sm:$0xff] }
 0x381   :  { %2062 = vmatprep.mubr.msk.f32.mxu1 %vm779_vm4, %v862_v14  ;;  %v1604_v14 = vld [vmem:[#allocation8] sm:$0xff] }
 0x382   :  { %v2165_v16 = vpop.eup %2164  ;;  %2063 = vmatmul.mubr.msk.f32.vlgmr.msra.gmra.mxu1 %vm779_vm4, %v863_v15  ;;  %v1705_v15 = vld [vmem:[%s2662_s14 + $0x38] sm:$0xff] }
 0x383   :  { %v2167_v17 = vpop.eup %2166  ;;  %2073 = vmatpush3.msra.mxu1 %v423_v11  ;;  %v865_v19 = vmul.f32 %v2165_v16, %v2151_v54  ;;  %v1704_v16 = vld [vmem:[%s2662_s14 + $0x30] sm:$0xff] }
 0x384   :  { %2074 = vmatprep.subr.mxu1 %v421_v18  ;;  %v864_v20 = vmul.f32 %v2167_v17, %v2149_v53  ;;  %v1703_v17 = vld [vmem:[%s2662_s14 + $0x28] sm:$0xff] }
 0x385   :  { %2075 = vmatpush3.msra.mxu1 %v421_v18  ;;  %v1702_v18 = vld [vmem:[%s2662_s14 + $0x20] sm:$0xff] }
 0x386   :  { %v2169_v21 = vpop.eup %2168  ;;  %2069 = vmatprep.mubr.msk.f32.mxu0 %vm779_vm4, %v864_v20  ;;  %2084 = vmatprep.subr.mxu1 %v1193_v25 }
 0x387   :  { %v2171_v22 = vpop.eup %2170  ;;  %2070 = vmatmul.mubr.msk.f32.vlgmr.msra.gmra.mxu0 %vm779_vm4, %v865_v19  ;;  %v867_v23 = vmul.f32 %v2169_v21, %v2155_v58 }
 0x388   :  { %v866_v24 = vmul.f32 %v2171_v22, %v2153_v57  ;;  %2080 = vmatpush3.msra.mxu0 %v1192_v40 }
 0x389   :  { %2089 = vmatprep.subr.mxu0 %v1194_v26 }
 0x38a   :  { %2076 = vmatprep.mubr.msk.f32.mxu1 %vm779_vm4, %v866_v24 }
 0x38b   :  { %2077 = vmatmul.mubr.msk.f32.vlgmr.msra.gmra.mxu1 %vm779_vm4, %v867_v23 }
 0x38c   :  { %2085 = vmatpush3.msra.mxu1 %v1193_v25 }
 0x38d   :  { %2094 = vmatprep.subr.mxu1 %v1195_v27 }
 0x3e8   :  { %v2057_v28 = vpop.f32.mrf.mxu0 }
 0x3ea   :  { %v940_v29 = vpop.f32.mrf.mxu0 }
 0x3eb   :  { %2081 = vmatprep.mubr.msk.f32.mxu0 %vm430_vm1, %v940_v29 }
 0x3ec   :  { %2082 = vmatmul.mubr.msk.f32.vlgmr.msra.gmra.mxu0 %vm430_vm1, %v2057_v28 }
 0x3ed   :  { %2090 = vmatpush3.msra.mxu0 %v1194_v26 }
 0x3ee   :  { %2099 = vmatprep.subr.mxu0 %v1607_v12 }
 0x442   :  { %v2064_v30 = vpop.f32.mrf.mxu1 }
 0x444   :  { %v1021_v31 = vpop.f32.mrf.mxu1 }
 0x445   :  { %2086 = vmatprep.mubr.msk.f32.mxu1 %vm430_vm1, %v1021_v31 }
 0x446   :  { %2087 = vmatmul.mubr.msk.f32.vlgmr.msra.gmra.mxu1 %vm430_vm1, %v2064_v30 }
 0x447   :  { %v2071_v32 = vpop.f32.mrf.mxu0  ;;  %2095 = vmatpush3.msra.mxu1 %v1195_v27 }
 0x448   :  { %2110 = vmatprep.subr.mxu1 %v1705_v15 }
 0x449   :  { %v1102_v33 = vpop.f32.mrf.mxu0 }
 0x44a   :  { %2091 = vmatprep.mubr.msk.f32.mxu0 %vm430_vm1, %v1102_v33 }
 0x44b   :  { %v2078_v34 = vpop.f32.mrf.mxu1  ;;  %2092 = vmatmul.mubr.msk.f32.vlgmr.msra.gmra.mxu0 %vm430_vm1, %v2071_v32 }
 0x44c   :  { %2100 = vmatpush3.msra.mxu0 %v1607_v12 }
 0x44d   :  { %v1183_v35 = vpop.f32.mrf.mxu1 }
 0x44e   :  { %2096 = vmatprep.mubr.msk.f32.mxu1 %vm430_vm1, %v1183_v35  ;;  %v2601_v35 = vld [vmem:[%s2658_s10] ss:$0 sm:$0xff] }
 0x44f   :  { %2097 = vmatmul.mubr.msk.f32.vlgmr.msra.gmra.mxu1 %vm430_vm1, %v2078_v34 }
 0x450   :  { %2111 = vmatpush3.msra.mxu1 %v1705_v15 }
 0x451   :  { %2112 = vmatprep.subr.mxu1 %v1704_v16 }
 0x452   :  { %2113 = vmatpush3.msra.mxu1 %v1704_v16 }
 0x453   :  { %2114 = vmatprep.subr.mxu1 %v1703_v17 }
 0x454   :  { %2115 = vmatpush3.msra.mxu1 %v1703_v17 }
 0x455   :  { %2116 = vmatprep.subr.mxu1 %v1702_v18 }
 0x456   :  { %2117 = vmatpush3.msra.mxu1 %v1702_v18 }
 0x4ac   :  { %v2083_v37 = vpop.f32.mrf.mxu0 }
 0x4ad   :  { %v1527_v44 = vsel %vm124_vm0, %v2083_v37, 0.0 }
 0x4ae   :  { %v1268_v39 = vpop.f32.mrf.mxu0 }
 0x4af   :  { %v1520_v49 = vsel %vm124_vm0, %v1268_v39, 0.0  ;;  %v2607_v39 = vld [vmem:[%s2659_s11] ss:$0 sm:$0xff] }
 0x506   :  { %v2088_v38 = vpop.f32.mrf.mxu1 }
 0x507   :  { %v1528_v42 = vsel %vm124_vm0, %v2088_v38, 0.0 }
 0x508   :  { %v1349_v41 = vpop.f32.mrf.mxu1  ;;  %v1529_v47 = vadd.f32 %v1528_v42, %v1527_v44 }
 0x509   :  { %v1521_v45 = vsel %vm124_vm0, %v1349_v41, 0.0 }
 0x50a   :  { %v1522_v51 = vadd.f32 %v1521_v45, %v1520_v49  ;;  %v1699_v49 = vld [vmem:[%s2662_s14 + $0x8] sm:$0xff] }
 0x50b   :  { %v2093_v43 = vpop.f32.mrf.mxu0 }
 0x50c   :  { %v1530_v46 = vsel %vm124_vm0, %v2093_v43, 0.0 }
 0x50d   :  { %v1430_v48 = vpop.f32.mrf.mxu0  ;;  %v1531_v52 = vadd.f32 %v1530_v46, %v1529_v47  ;;  %v1701_v47 = vld [vmem:[%s2662_s14 + $0x18] sm:$0xff] }
 0x50e   :  { %v1523_v50 = vsel %vm124_vm0, %v1430_v48, 0.0  ;;  %2118 = vmatprep.subr.mxu1 %v1701_v47  ;;  %v1700_v48 = vld [vmem:[%s2662_s14 + $0x10] sm:$0xff] }
 0x50f   :  { %v2098_v53 = vpop.f32.mrf.mxu1  ;;  %v1524_v56 = vadd.f32 %v1523_v50, %v1522_v51  ;;  %2119 = vmatpush3.msra.mxu1 %v1701_v47  ;;  %v1698_v50 = vld [vmem:[%s2662_s14] sm:$0xff] }
 0x510   :  { %v1532_v54 = vsel %vm124_vm0, %v2098_v53, 0.0  ;;  %2120 = vmatprep.subr.mxu1 %v1700_v48  ;;  %v1906_v51 = vld [vmem:[%s2661_s13] ss:$0 sm:$0xff]  ;;  %s2306_s13 = smov [#allocation10]  }
 0x511   :  { %v1533_v57 = vadd.f32 %v1532_v54, %v1531_v52  ;;  %v1511_v58 = vpop.f32.mrf.mxu1  ;;  %2121 = vmatpush3.msra.mxu1 %v1700_v48  ;;  %s1848_s14 = sshll.u32 %s2306_s13, 4  ;;  %s1849_s14 = int_to_ptr.vmem [resolvable:$true] %s1848_s14 }
 0x512   :  { %v1525_v59 = vsel %vm124_vm0, %v1511_v58, 0.0  ;;  %2122 = vmatprep.subr.mxu1 %v1699_v49  ;;  %v1909_v58 = vld [vmem:[%s2663_s15] ss:$0 sm:$0xff]  ;;  %s2268_s15 = scalar_lea.vmem %s1849_s14, 256  ;;  %p2273_p7 = scmp.lt.s32.totalorder %s1849_s14, %s1849_s14 }
 0x513   :  { %v1542_v60 = vadd.f32 %v1903_v55, %v1533_v57  ;;  %v1526_v61 = vadd.f32 %v1525_v59, %v1524_v56  ;;  %2123 = vmatpush3.msra.mxu1 %v1699_v49  ;;  %p2269_p6 = scmp.ne.s32.totalorder %s1849_s14, %s2268_s15  ;;  %p2274_p8 = scmp.lt.s32.totalorder %s2268_s15, %s2268_s15 }
 0x514   :  { %2124 = vmatprep.subr.mxu1 %v1698_v50 }
 0x515   :  { %v1541_v62 = vadd.f32 %v1903_v55, %v1526_v61  ;;  %v1546_v63 = vadd.f32 %v1542_v60, %v2442_v9  ;;  %2125 = vmatpush3.msra.mxu1 %v1698_v50  ;;  %p2275_p9 = por %p2274_p8, %p2273_p7 }
 0x517   :  { %v1550_v0 = vsel %vm124_vm0, %v1546_v63, 0.0  ;;  %v1545_v1 = vadd.f32 %v1541_v62, %v2437_v7  ;;  %v1606_v7 = vld [vmem:[#allocation8 + $0x10] sm:$0xff]  ;;  %p2276_p10 = pnand %p2275_p9, %p2269_p6 }
 0x518   :  { %1551 = vadd.xlane.f32.xlu1 %v1550_v0  ;;  %2101 = vmatprep.subr.mxu0 %v1606_v7 }
 0x519   :  { %v1547_v2 = vsel %vm124_vm0, %v1545_v1, 0.0  ;;  %2102 = vmatpush3.msra.mxu0 %v1606_v7 }
 0x51a   :  { %1548 = vadd.xlane.f32.xlu0 %v1547_v2  ;;  %2103 = vmatprep.subr.mxu0 %v1605_v13 }
 0x51b   :  { %2104 = vmatpush3.msra.mxu0 %v1605_v13 }
 0x51c   :  { %2105 = vmatprep.subr.mxu0 %v1604_v14 }
 0x51d   :  { %2106 = vmatpush3.msra.mxu0 %v1604_v14 }
 0x5a1   :  { %v1552_v3 = vpop.xlane.xlu1 %1551 }
 0x5a2   :  { %v1555_v40 = vmul.f32 0.03125, %v1552_v3 }
 0x5a3   :  { %v1549_v36 = vpop.xlane.xlu0 %1548 }
 0x5a4   :  { %v1554_v4 = vmul.f32 0.03125, %v1549_v36  ;;  %v1557_v5 = vsub.f32 %v1546_v63, %v1555_v40 }
 0x5a6   :  { %v1556_v6 = vsub.f32 %v1545_v1, %v1554_v4  ;;  %v1559_v11 = vmul.f32 %v1557_v5, %v1557_v5  ;;  %v1589_v42 = vmul.f32 %v2601_v35, %v1557_v5 }
 0x5a8   :  { %v1558_v8 = vmul.f32 %v1556_v6, %v1556_v6  ;;  %v1563_v9 = vsel %vm124_vm0, %v1559_v11, 0.0  ;;  %v1588_v37 = vmul.f32 %v2601_v35, %v1556_v6 }
 0x5aa   :  { %v1560_v10 = vsel %vm124_vm0, %v1558_v8, 0.0 }
 0x5ab   :  { %1561 = vadd.xlane.f32.xlu0 %v1560_v10 }
 0x5af   :  { %1564 = vadd.xlane.f32.xlu0 %v1563_v9 }
 0x634   :  { %v1562_v19 = vpop.xlane.xlu0 %1561 }
 0x635   :  { %v1566_v20 = vmul.f32 0.032258064, %v1562_v19 }
 0x637   :  { %2172 = vrsqrt.f32 %v1566_v20  ;;  %vm1570_vm5 = vcmp.eq.f32.partialorder %v1566_v20, inf  ;;  %v1573_v25 = vand.u32 2147483648, %v1566_v20  ;;  %vm1572_vm6 = vcmp.eq.f32.partialorder %v1566_v20, 0.0 }
 0x638   :  { %v1565_v21 = vpop.xlane.xlu0 %1564 }
 0x639   :  { %v1567_v22 = vmul.f32 0.032258064, %v1565_v21 }
 0x63b   :  { %2174 = vrsqrt.f32 %v1567_v22  ;;  %vm1577_vm7 = vcmp.eq.f32.partialorder %v1567_v22, inf  ;;  %v1580_v31 = vand.u32 2147483648, %v1567_v22  ;;  %vm1579_vm8 = vcmp.eq.f32.partialorder %v1567_v22, 0.0 }
 0x644   :  { %v2173_v23 = vpop.eup %2172 }
 0x645   :  { %v1569_v24 = vmul.f32 %v2173_v23, %v1566_v20 }
 0x647   :  { %v1571_v26 = vsel %vm1570_vm5, %v1566_v20, %v1569_v24 }
 0x648   :  { %v2175_v27 = vpop.eup %2174  ;;  %v1574_v28 = vsel %vm1572_vm6, %v1573_v25, %v1571_v26 }
 0x649   :  { %v1590_v29 = vadd.f32 1e-05, %v1574_v28  ;;  %v1576_v30 = vmul.f32 %v2175_v27, %v1567_v22 }
 0x64b   :  { %2176 = vrcp.f32 %v1590_v29  ;;  %v1578_v32 = vsel %vm1577_vm7, %v1567_v22, %v1576_v30 }
 0x64c   :  { %v1581_v33 = vsel %vm1579_vm8, %v1580_v31, %v1578_v32 }
 0x64d   :  { %v1591_v34 = vadd.f32 1e-05, %v1581_v33 }
 0x64f   :  { %2178 = vrcp.f32 %v1591_v34 }
 0x658   :  { %v2177_v38 = vpop.eup %2176 }
 0x659   :  { %v1593_v41 = vmul.f32 %v2177_v38, %v1588_v37 }
 0x65b   :  { %v1602_v43 = vadd.f32 %v2607_v39, %v1593_v41 }
 0x65c   :  { %v2179_v44 = vpop.eup %2178 }
 0x65d   :  { %2107 = vmatprep.mubr.msk.f32.mxu0 %vm124_vm0, %v1602_v43  ;;  %v1595_v45 = vmul.f32 %v2179_v44, %v1589_v42 }
 0x65f   :  { %v1603_v46 = vadd.f32 %v2607_v39, %v1595_v45 }
 0x661   :  { %2108 = vmatmul.mubr.msk.f32.vlgmr.msra.gmra.mxu0 %vm124_vm0, %v1603_v46 }
 0x721   :  { %v2109_v52 = vpop.f32.mrf.mxu0 }
 0x722   :  { %v1693_v53 = vadd.f32 %v2109_v52, %v1906_v51 }
 0x723   :  { %v1687_v54 = vpop.f32.mrf.mxu0 }
 0x724   :  { %v1688_v55 = vadd.f32 %v1906_v51, %v1687_v54  ;;  %v1697_v57 = vmax.f32 %v1693_v53, 0.0 }
 0x726   :  { %v1696_v56 = vmax.f32 %v1688_v55, 0.0 }
 0x728   :  { %2126 = vmatprep.mubr.msk.f32.mxu1 %vm1713_vm9, %v1696_v56 }
 0x729   :  { %2127 = vmatmul.mubr.msk.f32.vlgmr.msra.gmra.mxu1 %vm1713_vm9, %v1697_v57 }
 0x7e9   :  { %v2128_v59 = vpop.f32.mrf.mxu1 }
 0x7ea   :  { %v1792_v60 = vadd.f32 %v2128_v59, %v1909_v58 }
 0x7eb   :  { %v1786_v61 = vpop.f32.mrf.mxu1 }
 0x7ec   :  { %v1787_v62 = vadd.f32 %v1909_v58, %v1786_v61  ;;  %v1796_v63 = vadd.f32 %v1792_v60, %v1603_v46 }
 0x7ee   :  { %v1800_v0 = vsel %vm124_vm0, %v1796_v63, 0.0  ;;  %v1795_v1 = vadd.f32 %v1787_v62, %v1602_v43 }
 0x7ef   :  { %1801 = vadd.xlane.f32.xlu0 %v1800_v0 }
 0x7f0   :  { %v1797_v2 = vsel %vm124_vm0, %v1795_v1, 0.0 }
 0x7f1   :  { %1798 = vadd.xlane.f32.xlu1 %v1797_v2 }
 0x878   :  { %v1802_v3 = vpop.xlane.xlu0 %1801 }
 0x879   :  { %v1804_v40 = vmul.f32 0.03125, %v1802_v3 }
 0x87a   :  { %v1799_v36 = vpop.xlane.xlu1 %1798 }
 0x87b   :  { %v1806_v4 = vsub.f32 %v1796_v63, %v1804_v40  ;;  %v1803_v5 = vmul.f32 0.03125, %v1799_v36 }
 0x87d   :  { %v1805_v6 = vsub.f32 %v1795_v1, %v1803_v5  ;;  %v1808_v8 = vmul.f32 %v1806_v4, %v1806_v4  ;;  %v1832_v27 = vmul.f32 %v2601_v35, %v1806_v4 }
 0x87f   :  { %v1812_v10 = vsel %vm124_vm0, %v1808_v8, 0.0  ;;  %v1807_v11 = vmul.f32 %v1805_v6, %v1805_v6  ;;  %v1831_v30 = vmul.f32 %v2601_v35, %v1805_v6 }
 0x880   :  { %1813 = vadd.xlane.f32.xlu0 %v1812_v10 }
 0x881   :  { %v1809_v9 = vsel %vm124_vm0, %v1807_v11, 0.0 }
 0x882   :  { %1810 = vadd.xlane.f32.xlu1 %v1809_v9 }
 0x909   :  { %v1814_v12 = vpop.xlane.xlu0 %1813 }
 0x90a   :  { %v1816_v7 = vmul.f32 0.032258064, %v1814_v12 }
 0x90b   :  { %v1811_v13 = vpop.xlane.xlu1 %1810 }
 0x90c   :  { %2180 = vrsqrt.f32 %v1816_v7  ;;  %v1815_v14 = vmul.f32 0.032258064, %v1811_v13  ;;  %vm1826_vm10 = vcmp.eq.f32.partialorder %v1816_v7, inf  ;;  %v1829_v17 = vand.u32 2147483648, %v1816_v7 }
 0x90d   :  { %vm1828_vm11 = vcmp.eq.f32.partialorder %v1816_v7, 0.0 }
 0x90e   :  { %2182 = vrsqrt.f32 %v1815_v14  ;;  %vm1819_vm12 = vcmp.eq.f32.partialorder %v1815_v14, inf  ;;  %v1822_v23 = vand.u32 2147483648, %v1815_v14  ;;  %vm1821_vm13 = vcmp.eq.f32.partialorder %v1815_v14, 0.0 }
 0x919   :  { %v2181_v15 = vpop.eup %2180 }
 0x91a   :  { %v1825_v16 = vmul.f32 %v2181_v15, %v1816_v7 }
 0x91b   :  { %v2183_v18 = vpop.eup %2182 }
 0x91c   :  { %v1827_v19 = vsel %vm1826_vm10, %v1816_v7, %v1825_v16  ;;  %v1818_v21 = vmul.f32 %v2183_v18, %v1815_v14 }
 0x91d   :  { %v1830_v20 = vsel %vm1828_vm11, %v1829_v17, %v1827_v19 }
 0x91e   :  { %v1834_v22 = vadd.f32 1e-05, %v1830_v20  ;;  %v1820_v24 = vsel %vm1819_vm12, %v1815_v14, %v1818_v21 }
 0x91f   :  { %v1823_v25 = vsel %vm1821_vm13, %v1822_v23, %v1820_v24 }
 0x920   :  { %2184 = vrcp.f32 %v1834_v22  ;;  %v1833_v26 = vadd.f32 1e-05, %v1823_v25 }
 0x922   :  { %2186 = vrcp.f32 %v1833_v26 }
 0x92d   :  { %v2185_v28 = vpop.eup %2184 }
 0x92e   :  { %v1838_v29 = vmul.f32 %v2185_v28, %v1832_v27 }
 0x92f   :  { %v2187_v31 = vpop.eup %2186 }
 0x930   :  { %v1840_v32 = vadd.f32 %v2607_v39, %v1838_v29  ;;  %v1836_v33 = vmul.f32 %v2187_v31, %v1831_v30 }
 0x932   :  { %1842 = vst.msk [vmem:[#allocation10 + $0x8] sm:$0xff] %vm124_vm0, %v1840_v32  ;;  %v1839_v34 = vadd.f32 %v2607_v39, %v1836_v33 }
 0x934   :  { %1841 = vst.msk [vmem:[#allocation10] sm:$0xff] %vm124_vm0, %v1839_v34 }
 0x935   :  { %2279 = shalt.err (!%p2276_p10)
}
 0x936   :  { %1854 = dma.vmem_to_hbm [thread:$0]  %s1849_s14, 256, %s2664_s16, [#allocation4], %s2298_s26, %s2298_s26, %s2299_s27  }
 0x937   :  { %2294 = dma.done.wait [#allocation4], 256  }
 0x938   :  { %2295 = vsyncadd [#allocation4], 4294967040 }
 0x939   :  { %1858 = vsyncpa [#allocation3], 1 }
 0x93a   :  { %1859 = vsyncpa [#allocation6], 1 }
 0x93b   :  { %1860 = vsyncpa [#allocation9], 1 }
 0x93c   :  { %1861 = vsyncpa [#allocation4], 1 }

</bundles_post_ra>
